<compile_context>
chip_gen: v5e
topology: v5e:2x2
jax: 0.10.0
libtpu: 0.0.40
codegen_flags: <defaults>
</compile_context>

<pallas_src>
import functools

import numpy as np
import jax
import jax.numpy as jnp
from jax.experimental import pallas as pl
from jax.experimental.pallas import tpu as pltpu

S = 8    # number of state elements
HD = 32  # hidden size of the kwarg input
G = 2    # num_groups (batch)


# ----------------------------- Pallas kernel -------------------------------

def _hf_kernel(x_ref, w_ref, o_ref, *, hd):
    """Fused h_module + f_module + diag_embed + f_tensors forward.

    x: (G_pad, HD)
    w: (rows, 128) where rows >= HD+1:
         rows [0:HD]   -> weight columns: lanes [0:S] = Wh^T,
                          lane S + r*S + r = column r of Wf^T, rest zero.
         row  HD       -> bias: bh in lanes [0:S], bf[r] at lane S + r*(S+1),
                          constant f_tensors entries at lane S + r*S + c.
    out: (G_pad, 128) = [ H | F.flatten() | 0 ]
    """
    y = jnp.dot(x_ref[...], w_ref[pl.ds(0, hd), :],
                preferred_element_type=jnp.float32)
    o_ref[...] = y + w_ref[pl.ds(hd, 1), :]


def _hf_pallas(x, w_aug, *, s, hd, lanes):
    g = x.shape[0]
    g_pad = max(8, ((g + 7) // 8) * 8)
    if g_pad != g:
        x_in = jnp.zeros((g_pad, hd), x.dtype).at[:g, :].set(x)
    else:
        x_in = x

    out = pl.pallas_call(
        functools.partial(_hf_kernel, hd=hd),
        out_shape=jax.ShapeDtypeStruct((g_pad, lanes), jnp.float32),
        in_specs=[
            pl.BlockSpec(memory_space=pltpu.MemorySpace.VMEM),
            pl.BlockSpec(memory_space=pltpu.MemorySpace.VMEM),
        ],
        out_specs=pl.BlockSpec(memory_space=pltpu.MemorySpace.VMEM),
    )(x_in, w_aug)

    H = out[:g, :s]
    F = out[:g, s:s + s * s].reshape(g, s, s)
    return H, F


# ----------------------------- Process (JAX) -------------------------------

class ProcessPallas:
    """JAX/Pallas mirror of torch_kalman Process with a Linear h_module,
    an 'all_self' Linear f_module, and fixed off-diagonal f_tensors."""

    def __init__(self, proc_id, state_elements, measure, key):
        self.id = proc_id
        self.state_elements = list(state_elements)
        self.se_to_idx = {se: i for i, se in enumerate(self.state_elements)}
        assert len(self.state_elements) == len(self.se_to_idx)
        s = len(self.state_elements)
        self._s = s

        k1, k2, k3, k4, k5 = jax.random.split(key, 5)
        # nn.Parameter(0.1 * torch.randn(len(state_elements)))
        self.init_mean = 0.1 * jax.random.normal(k1, (s,), jnp.float32)

        # h_module: Linear(HD -> S)
        self.wh = 0.1 * jax.random.normal(k2, (s, HD), jnp.float32)
        self.bh = 0.1 * jax.random.normal(k3, (s,), jnp.float32)
        self.h_kwarg = "X"

        # f_modules: {'all_self': Linear(HD -> S)}
        self.wf = 0.1 * jax.random.normal(k4, (s, HD), jnp.float32)
        self.bf = 0.1 * jax.random.normal(k5, (s,), jnp.float32)
        self.f_kwarg = "X"

        # The fused kernel (and the shared cache entry) requires both matrices
        # to be functions of the same kwarg input.
        assert self.h_kwarg == self.f_kwarg, (
            "fused H/F kernel requires h_kwarg == f_kwarg")

        # f_tensors: {'x1->x2': 1.0}  -> F[:, idx('x2'), idx('x1')] = 1.0
        self.f_tensors = {"x1->x2": 1.0}
        assignments = []
        for key_ft, v in self.f_tensors.items():
            from_el, _, to_el = key_ft.partition("->")
            r, c = self.se_to_idx[to_el], self.se_to_idx[from_el]
            # torch asserts this whenever 'all_self' is used; required here so
            # the constant can be folded into the bias row (add == overwrite).
            assert r != c, (
                "cannot have {se}->{same-se} transitions with 'all_self'")
            assignments.append(((r, c), float(v)))
        self._assignments = tuple(assignments)

        # ---- Build the single augmented weight at init (done once). ----
        # Lane layout of the kernel output:  [ H (S) | F row-major (S*S) | 0 ]
        lanes = max(128, ((s + s * s + 127) // 128) * 128)
        rows = ((HD + 1 + 7) // 8) * 8          # weight rows + 1 bias row, pad to 8
        self._lanes = lanes
        w_np = np.zeros((rows, lanes), np.float32)
        wh_np, bh_np = np.asarray(self.wh), np.asarray(self.bh)
        wf_np, bf_np = np.asarray(self.wf), np.asarray(self.bf)
        # H: lanes [0:S]
        w_np[:HD, :s] = wh_np.T
        w_np[HD, :s] = bh_np
        # diag of F: 'all_self' column r lands directly on lane S + r*S + r,
        # which IS the diag-embed (all other F lanes have zero weight).
        for r in range(s):
            w_np[:HD, s + r * s + r] = wf_np[r, :]
            w_np[HD, s + r * s + r] = bf_np[r]
        # fixed off-diagonal f_tensors entries folded into the bias row.
        for (r, c), v in self._assignments:
            w_np[HD, s + r * s + c] = v
        self.w_aug = jnp.asarray(w_np)

        self.measure = "" if measure is None else measure
        # NOTE: with time_varying_kwargs=None the cache key is static — a new X
        # under the same cache dict is silently ignored (mirrors torch contract).
        self.time_varying_kwargs = None

        # Compile the fused H/F kernel once.
        self._hf_fn = jax.jit(functools.partial(
            _hf_pallas, s=s, hd=HD, lanes=lanes))

    # ----- public API mirroring the torch module -----

    def get_initial_state_mean(self, input=None):
        assert input is None or len(input) == 0
        assert self.init_mean.shape[-1] == len(self.state_elements)
        return self.init_mean

    def forward(self, inputs, which, cache):
        if which not in ("h", "f"):
            raise RuntimeError(f"Unrecognized which='{which}'.")
        kwarg = self.h_kwarg if which == "h" else self.f_kwarg
        x = inputs[kwarg]
        ckey = self._get_cache_key(kwarg, x, prefix=f"{self.id}_{which}")
        if ckey is not None:
            if ckey not in cache:
                H, F = self._hf_forward(x)
                # Both come from one fused kernel; populate both static cache
                # slots so the other `which` is served for free.
                h_key = self._get_cache_key(self.h_kwarg, x, prefix=f"{self.id}_h")
                f_key = self._get_cache_key(self.f_kwarg, x, prefix=f"{self.id}_f")
                if h_key is not None:
                    cache[h_key] = H
                if f_key is not None:
                    cache[f_key] = F
            return cache[ckey]
        H, F = self._hf_forward(x)
        return H if which == "h" else F

    def _get_cache_key(self, kwarg, input, prefix):
        if self.time_varying_kwargs is not None and kwarg in self.time_varying_kwargs:
            return None
        return f"{prefix}_static"

    # ----- fused h / f forward (Pallas hot path) -----

    def _hf_forward(self, x):
        H, F = self._hf_fn(x, self.w_aug)
        if not self._validate_h_shape(H):
            raise RuntimeError(
                f"`Process(id='{self.id}').h_forward()` produced output with shape "
                f"{H.shape}, but expected ({len(self.state_elements)},) or "
                f"(num_groups, {len(self.state_elements)}). "
                f"Input had shape {x.shape}."
            )
        return H, F

    # kept for API parity with the torch module
    def h_forward(self, x):
        return self._hf_forward(x)[0]

    def f_forward(self, x):
        return self._hf_forward(x)[1]

    def _validate_h_shape(self, H):
        s = len(self.state_elements)
        if H.ndim > 3:
            return False
        if H.ndim == 3 and H.shape[-1] != 1:
            return False
        if H.ndim == 1 and s != 1 and H.shape[0] != s:
            return False
        if H.ndim == 2 and H.shape[-1] != s:
            return False
        return True


# --------------------------------- main ------------------------------------

if __name__ == "__main__":
    key = jax.random.PRNGKey(0)
    kp, kx = jax.random.split(key)

    state_elements = [f"x{i + 1}" for i in range(S)]
    proc = ProcessPallas("proc", state_elements, measure="y", key=kp)

    x = jax.random.normal(kx, (G, HD), jnp.float32)
    inputs = {"X": x}
    cache = {}

    H = proc.forward(inputs, "h", cache)
    F = proc.forward(inputs, "f", cache)   # served from the fused cache entry
    m0 = proc.get_initial_state_mean()
    jax.block_until_ready((H, F, m0))

    # cached paths return the identical (static) results
    H2 = proc.forward(inputs, "h", cache)
    F2 = proc.forward(inputs, "f", cache)

    # pure-JAX reference (mirrors the torch module)
    H_ref = x @ proc.wh.T + proc.bh
    diag_ref = x @ proc.wf.T + proc.bf
    F_ref = jax.vmap(jnp.diag)(diag_ref)
    r, c = proc.se_to_idx["x2"], proc.se_to_idx["x1"]
    F_ref = F_ref.at[:, r, c].set(1.0)

    assert H.shape == (G, S) and F.shape == (G, S, S) and m0.shape == (S,)
    assert jnp.allclose(H, H_ref, atol=1e-5, rtol=1e-5)
    assert jnp.allclose(H2, H_ref, atol=1e-5, rtol=1e-5)
    assert jnp.allclose(F, F_ref, atol=1e-5, rtol=1e-5)
    assert jnp.allclose(F2, F_ref, atol=1e-5, rtol=1e-5)

    # TODO(synk): get_kwargs / jit.ignore plumbing is config-time Python glue with
    # no numeric compute, so it is not ported to the kernel.
    print("KERNEL_OK")
</pallas_src>

<mosaic_0001>
module attributes {stable_mosaic.version = 11 : i64} {
  func.func @_hf_kernel(%arg0: memref<8x32xf32, #tpu.memory_space<vmem>>, %arg1: memref<40x128xf32, #tpu.memory_space<vmem>>, %arg2: memref<8x128xf32, #tpu.memory_space<vmem>>) attributes {dimension_semantics = [], scalar_prefetch = 0 : i64, scratch_operands = 0 : i64, tpu.core_type = #tpu.core_type<tc>} {
    %c0 = arith.constant 0 : index
    %c0_0 = arith.constant 0 : index
    %0 = vector.load %arg0[%c0, %c0_0] : memref<8x32xf32, #tpu.memory_space<vmem>>, vector<8x32xf32>
    %c0_1 = arith.constant 0 : index
    %c0_2 = arith.constant 0 : index
    %1 = vector.load %arg1[%c0_1, %c0_2] : memref<40x128xf32, #tpu.memory_space<vmem>>, vector<32x128xf32>
    %cst = arith.constant dense<0.000000e+00> : vector<8x128xf32>
    %2 = tpu.matmul %0, %1, %cst {dimension_numbers = #tpu.dot_dimension_numbers<[1], [0], [0], [1], [0, 0, 1, 1], [], []>} : vector<8x32xf32>, vector<32x128xf32>, vector<8x128xf32> -> vector<8x128xf32>
    %c32 = arith.constant 32 : index
    %c0_3 = arith.constant 0 : index
    %3 = vector.load %arg1[%c32, %c0_3] : memref<40x128xf32, #tpu.memory_space<vmem>>, vector<1x128xf32>
    %4 = vector.broadcast %3 : vector<1x128xf32> to vector<8x128xf32>
    %5 = arith.addf %2, %4 : vector<8x128xf32>
    %c0_4 = arith.constant 0 : index
    %c0_5 = arith.constant 0 : index
    %6 = vector.load %arg2[%c0_4, %c0_5] : memref<8x128xf32, #tpu.memory_space<vmem>>, vector<8x128xf32>
    tpu.vector_store %arg2[%c0_4, %c0_5], %5 {strides = array<i32>} : memref<8x128xf32, #tpu.memory_space<vmem>>, vector<8x128xf32>,
    return
  }
}

</mosaic_0001>

<bundles_post_ra>
// kernel: _hf_pallas.1
= control target key start
LH: loop header
LB: loop body
LE: loop exit
PB: predicated region body
PF: predicated region fallthrough
CT: control target
= control target key end

     0   :  { %7 = vsyncpa [#allocation3], 0  ;;  %s95_s12 = smov [#allocation2]   ;;  %s96_s14 = smov 128   ;;  %s122_s0 = inlined_call_operand.vmem [shape: f32[8,32], index: 0, kind: input, shape index: {}]   ;;  %s123_s1 = inlined_call_operand.hbm [shape: f32[40,128], index: 1, kind: input, shape index: {}]   ;;  %s124_s2 = inlined_call_operand.vmem [shape: f32[8,128], index: 2, kind: output, shape index: {}]  }
   0x1   :  { %s14_s11 = sshll.u32 %s123_s1, 4  ;;  %s16_s13 = sshll.u32 %s95_s12, 4  ;;  %s15_s11 = int_to_ptr.hbm [resolvable:$true] %s14_s11  ;;  %s17_s13 = int_to_ptr.vmem [resolvable:$true] %s16_s13 }
   0x2   :  { %s97_s15 = smov 8  }
   0x3   :  { %22 = dma.hbm_to_vmem [thread:$0]  %s15_s11, 640, %s17_s13, [#allocation3], %s96_s14, %s96_s14, %s97_s15  }
   0x4   :  { %93 = dma.done.wait [#allocation3], 640  }
   0x5   :  { %94 = vsyncadd [#allocation3], 4294966656  ;;  %v31_v0 = vld [vmem:[#allocation2 + $0x18] sm:$0xff]  ;;  %v30_v1 = vld [vmem:[#allocation2 + $0x10] sm:$0xff]  ;;  %vm34_vm0 = vcmask 261120  }
   0x6   :  { %50 = vmatpush.msra.mxu0 %v31_v0  ;;  %v29_v2 = vld [vmem:[#allocation2 + $0x8] sm:$0xff]  ;;  %v28_v3 = vld [vmem:[#allocation2] sm:$0xff] }
   0x7   :  { %v27_v4 = vld [vmem:[%s122_s0] sm:$0xff] }
   0x8   :  { %51 = vmatpush.msra.mxu0 %v30_v1  ;;  %v68_v5 = vld [vmem:[#allocation2 + $0x20] ss:$0 sm:$0xff] }
   0xa   :  { %52 = vmatpush.msra.mxu0 %v29_v2 }
   0xc   :  { %53 = vmatpush.msra.mxu0 %v28_v3 }
   0xd   :  { %64 = vmatmul.msk.f32.vlgmr.msra.gmra.mxu0 %vm34_vm0, %v27_v4 }
  0x8a   :  { %v55_v6 = vpop.f32.mrf.mxu0 }
  0x8b   :  { %v56_v7 = vadd.f32 %v68_v5, %v55_v6 }
  0x8d   :  { %58 = vst [vmem:[%s124_s2] sm:$0xff] %v56_v7 }
  0x8e   :  { %63 = vsyncpa [#allocation3], 1 }

</bundles_post_ra>
